<compile_context>
chip_gen: v7x
topology: tpu7x:2x2x1
jax: 0.10.0
libtpu: 0.0.40
codegen_flags: <defaults>
</compile_context>

<pallas_src>
import functools

import jax
import jax.numpy as jnp
from jax import lax
from jax.experimental import pallas as pl
from jax.experimental.pallas import tpu as pltpu


def sparse_loss_kernel(logits_ref, labels_ref, partial_ref):
    # logits_ref: (TILE_N, C) float (any dtype, upcast here)
    # labels_ref: (TILE_N, 1) int32, padded rows carry -1
    # partial_ref: (1, 8, C) f32 per-tile partial sums
    x = logits_ref[...].astype(jnp.float32)          # (TILE_N, C)
    tile_n, c = x.shape
    labels = labels_ref[...]                         # (TILE_N, 1) int32

    # softmax over the class (lane) axis — norm == 'softmax'
    m = jnp.max(x, axis=-1, keepdims=True)
    e = jnp.exp(x - m)
    p = e * pl.reciprocal(jnp.sum(e, axis=-1, keepdims=True), approx=False)

    # MSE against one-hot(labels) without materializing the one-hot:
    classes = lax.broadcasted_iota(jnp.int32, (tile_n, c), 1)
    diff = jnp.where(labels == classes, p - 1.0, p)  # (TILE_N, C)
    sq = diff * diff
    # mask rows added by wrapper padding (label == -1)
    sq = jnp.where(labels >= 0, sq, 0.0)

    # Reduce TILE_N rows down to 8 rows with a pairwise tree of elementwise VPU
    # adds over 8-row groups (no XLU cross-lane reduce on the per-tile path);
    # the wrapper finishes the tiny (num_tiles, 8, C) sum.
    groups = [sq[g * 8:(g + 1) * 8, :] for g in range(tile_n // 8)]
    while len(groups) > 1:
        nxt = [a + b for a, b in zip(groups[0::2], groups[1::2])]
        if len(groups) % 2:
            nxt.append(groups[-1])
        groups = nxt
    partial_ref[0] = groups[0]                       # (8, C)


def _round_up(v, m):
    return ((v + m - 1) // m) * m


@functools.partial(jax.jit, static_argnames=())
def _final_sum(partials):
    return jnp.sum(partials)


def sparse_loss(logits, labels):
    """logits: (N, C) float (f32 or bf16); labels: (N,) int. Returns scalar f32 loss:
       sum((softmax(logits) - onehot(labels))**2)."""
    n, c = logits.shape
    itemsize = jnp.dtype(logits.dtype).itemsize

    # Tile sizing: ~2 MiB logits block (safe for v7x 64 MiB VMEM and v5e's scoped
    # limit once raised), rows a multiple of 16 (bf16 sublane packing), capped,
    # and never larger than the (rounded-up) problem itself.
    target_bytes = 2 * 1024 * 1024
    tile_n = target_bytes // max(1, c * itemsize)
    tile_n = max(16, min(1024, (tile_n // 16) * 16))
    tile_n = min(tile_n, max(16, _round_up(n, 16)))

    n_pad = _round_up(n, tile_n)
    num_tiles = n_pad // tile_n

    labels2d = labels.reshape(n, 1).astype(jnp.int32)
    if n_pad != n:
        pad = n_pad - n
        logits = jnp.pad(logits, ((0, pad), (0, 0)))
        labels2d = jnp.pad(labels2d, ((0, pad), (0, 0)), constant_values=-1)

    grid_spec = pltpu.PrefetchScalarGridSpec(
        num_scalar_prefetch=0,
        grid=(num_tiles,),
        in_specs=[
            pl.BlockSpec((tile_n, c), lambda i: (i, 0)),   # logits tile (VMEM)
            pl.BlockSpec((tile_n, 1), lambda i: (i, 0)),   # labels tile (VMEM)
        ],
        out_specs=pl.BlockSpec((1, 8, c), lambda i: (i, 0, 0)),
    )

    cost = pl.CostEstimate(
        flops=int(8 * n_pad * c),
        transcendentals=int(n_pad * c),
        bytes_accessed=int(n_pad * c * itemsize + n_pad * 4 + num_tiles * 8 * c * 4),
    )

    partials = pl.pallas_call(
        sparse_loss_kernel,
        out_shape=jax.ShapeDtypeStruct((num_tiles, 8, c), jnp.float32),
        grid_spec=grid_spec,
        compiler_params=pltpu.CompilerParams(
            dimension_semantics=("parallel",),      # tiles are independent partials
            vmem_limit_bytes=32 * 1024 * 1024,      # v5e default scoped is only 16 MiB
        ),
        cost_estimate=cost,
    )(logits, labels2d)

    return _final_sum(partials)


def sparse_loss_ref(logits, labels):
    p = jax.nn.softmax(logits.astype(jnp.float32), axis=-1)
    onehot = jax.nn.one_hot(labels, logits.shape[-1], dtype=jnp.float32)
    return jnp.sum((p - onehot) ** 2)


if __name__ == "__main__":
    key = jax.random.PRNGKey(0)
    k1, k2 = jax.random.split(key)

    N, C = 8, 32  # seq=8 rows, hidden/classes=32
    logits = jax.random.normal(k1, (N, C), dtype=jnp.float32)
    labels = jax.random.randint(k2, (N,), 0, C, dtype=jnp.int32)

    loss = jax.block_until_ready(sparse_loss(logits, labels))
    ref = jax.block_until_ready(sparse_loss_ref(logits, labels))

    assert jnp.allclose(loss, ref, rtol=1e-5, atol=1e-5), (loss, ref)
    print("KERNEL_OK")
</pallas_src>

<mosaic_0001>
module attributes {stable_mosaic.version = 11 : i64} {
  func.func @sparse_loss_kernel(%arg0: i32, %arg1: memref<16x32xf32, #tpu.memory_space<vmem>>, %arg2: memref<16x1xi32, #tpu.memory_space<vmem>>, %arg3: memref<1x8x32xf32, #tpu.memory_space<vmem>>) attributes {dimension_semantics = [#tpu.dimension_semantics<parallel>], iteration_bounds = array<i64: 1>, scalar_prefetch = 0 : i64, scratch_operands = 0 : i64, tpu.core_type = #tpu.core_type<tc>, window_params = [{transform_indices = @transform_0, window_bounds = array<i64: 16, 32>}, {transform_indices = @transform_1, window_bounds = array<i64: 16, 1>}, {transform_indices = @transform_2, window_bounds = array<i64: 1, 8, 32>}]} {
    %c0 = arith.constant 0 : index
    %c0_0 = arith.constant 0 : index
    %0 = vector.load %arg1[%c0, %c0_0] : memref<16x32xf32, #tpu.memory_space<vmem>>, vector<16x32xf32>
    %c0_1 = arith.constant 0 : index
    %c0_2 = arith.constant 0 : index
    %1 = vector.load %arg2[%c0_1, %c0_2] : memref<16x1xi32, #tpu.memory_space<vmem>>, vector<16x1xi32>
    %cst = arith.constant dense<0xFF800000> : vector<16xf32>
    %2 = vector.multi_reduction <maximumf>, %0, %cst [1] : vector<16x32xf32> to vector<16xf32>
    %3 = vector.shape_cast %2 : vector<16xf32> to vector<16x1xf32>
    %4 = vector.broadcast %3 : vector<16x1xf32> to vector<16x32xf32>
    %5 = arith.subf %0, %4 : vector<16x32xf32>
    %6 = math.exp %5 : vector<16x32xf32>
    %cst_3 = arith.constant dense<0.000000e+00> : vector<16xf32>
    %7 = vector.multi_reduction <add>, %6, %cst_3 [1] : vector<16x32xf32> to vector<16xf32>
    %8 = vector.shape_cast %7 : vector<16xf32> to vector<16x1xf32>
    %9 = tpu.reciprocal %8 : vector<16x1xf32> -> vector<16x1xf32>
    %10 = vector.broadcast %9 : vector<16x1xf32> to vector<16x32xf32>
    %11 = arith.mulf %6, %10 : vector<16x32xf32>
    %12 = tpu.iota {dimensions = array<i32: 1>} : vector<16x32xi32>
    %13 = vector.broadcast %1 : vector<16x1xi32> to vector<16x32xi32>
    %14 = arith.cmpi eq, %13, %12 : vector<16x32xi32>
    %cst_4 = arith.constant 1.000000e+00 : f32
    %15 = vector.broadcast %cst_4 : f32 to vector<16x32xf32>
    %16 = arith.subf %11, %15 : vector<16x32xf32>
    %17 = arith.select %14, %16, %11 : vector<16x32xi1>, vector<16x32xf32>
    %18 = arith.mulf %17, %17 : vector<16x32xf32>
    %c0_i32 = arith.constant 0 : i32
    %19 = vector.broadcast %c0_i32 : i32 to vector<16x1xi32>
    %20 = arith.cmpi sge, %1, %19 : vector<16x1xi32>
    %cst_5 = arith.constant 0.000000e+00 : f32
    %21 = vector.shape_cast %20 : vector<16x1xi1> to vector<16x1xi1>
    %22 = vector.broadcast %21 : vector<16x1xi1> to vector<16x32xi1>
    %23 = vector.broadcast %cst_5 : f32 to vector<16x32xf32>
    %24 = arith.select %22, %18, %23 : vector<16x32xi1>, vector<16x32xf32>
    %25 = vector.extract_strided_slice %24 {offsets = [0, 0], sizes = [8, 32], strides = [1, 1]} : vector<16x32xf32> to vector<8x32xf32>
    %26 = vector.extract_strided_slice %24 {offsets = [8, 0], sizes = [8, 32], strides = [1, 1]} : vector<16x32xf32> to vector<8x32xf32>
    %27 = arith.addf %25, %26 : vector<8x32xf32>
    %c0_6 = arith.constant 0 : index
    %c0_7 = arith.constant 0 : index
    %c0_8 = arith.constant 0 : index
    %28 = vector.load %arg3[%c0_6, %c0_7, %c0_8] : memref<1x8x32xf32, #tpu.memory_space<vmem>>, vector<1x8x32xf32>
    %29 = vector.shape_cast %28 : vector<1x8x32xf32> to vector<8x32xf32>
    %30 = vector.shape_cast %27 : vector<8x32xf32> to vector<1x8x32xf32>
    tpu.vector_store %arg3[%c0_6, %c0_7, %c0_8], %30 {strides = array<i32>} : memref<1x8x32xf32, #tpu.memory_space<vmem>>, vector<1x8x32xf32>,
    return
  }
  func.func @transform_0(%arg0: i32) -> (i32, i32) {
    %c0_i32 = arith.constant 0 : i32
    %c0_i32_0 = arith.constant 0 : i32
    return %arg0, %c0_i32 : i32, i32
  }
  func.func @transform_1(%arg0: i32) -> (i32, i32) {
    %c0_i32 = arith.constant 0 : i32
    %c0_i32_0 = arith.constant 0 : i32
    return %arg0, %c0_i32 : i32, i32
  }
  func.func @transform_2(%arg0: i32) -> (i32, i32, i32) {
    %c0_i32 = arith.constant 0 : i32
    %c0_i32_0 = arith.constant 0 : i32
    %c0_i32_1 = arith.constant 0 : i32
    return %arg0, %c0_i32, %c0_i32_0 : i32, i32, i32
  }
}

</mosaic_0001>

<bundles_post_ra>
// kernel: tpu_custom_call.1
= control target key start
LH: loop header
LB: loop body
LE: loop exit
PB: predicated region body
PF: predicated region fallthrough
CT: control target
= control target key end

     0   :  { %vm16_vm0 = vcmask 261120   ;;  %v123_v4 = vmov 0   ;;  %s169_s0 = inlined_call_operand.vmem [shape: f32[16,32], index: 0, kind: input, shape index: {}]   ;;  %s170_s1 = inlined_call_operand.vmem [shape: s32[16,1], index: 1, kind: input, shape index: {}]   ;;  %s171_s2 = inlined_call_operand.hbm [shape: f32[1,8,32], index: 2, kind: output, shape index: {}]  }
   0x1   :  { %v12_v0 = vld [vmem:[%s169_s0] sm:$0xff]  ;;  %v13_v1 = vld [vmem:[%s169_s0 + $0x8] sm:$0xff]  ;;  %90 = vset.pattern.permute.xlu1 %v123_v4  ;;  %89 = vset.pattern.permute.xlu0 %v123_v4 }
   0x2   :  { %v15_v2 = vld [vmem:[%s170_s1 + $0x8] sm:$0xff]  ;;  %v17_v3 = vsel %vm16_vm0, %v12_v0, -inf  ;;  %v14_v5 = vld [vmem:[%s170_s1] sm:$0xff] }
   0x3   :  { %7 = vsyncpa [#allocation3], 0  ;;  %18 = vmax.xlane.f32.xlu0 %v17_v3  ;;  %45 = vperm.xlu1 %90, %v15_v2   ;;  %vm55_vm1 = vcmp.ge.s32.totalorder %v14_v5, 0  ;;  %v20_v6 = vsel %vm16_vm0, %v13_v1, -inf  ;;  %vm56_vm2 = vcmp.ge.s32.totalorder %v15_v2, 0  ;;  %v39_v23 = vlaneseq  ;;  %s124_s0 = smov [#allocation2]  }
   0x4   :  { %v57_v7 = vsel %vm55_vm1, 1, %v123_v4  ;;  %v58_v8 = vsel %vm56_vm2, 1, %v123_v4  ;;  %s77_s1 = sshll.u32 %s124_s0, 4  ;;  %s78_s1 = int_to_ptr.vmem [resolvable:$true] %s77_s1 }
   0x5   :  { %v40_v26 = vand.u32 127, %v39_v23  ;;  %s99_s17 = scalar_lea.vmem %s78_s1, 128  ;;  %p104_p1 = scmp.lt.s32.totalorder %s78_s1, %s78_s1 }
   0x6   :  { %p100_p0 = scmp.ne.s32.totalorder %s78_s1, %s99_s17  ;;  %p105_p2 = scmp.lt.s32.totalorder %s99_s17, %s99_s17 }
   0x7   :  { %21 = vmax.xlane.f32.xlu0 %v20_v6  ;;  %60 = vperm.xlu1 %90, %v57_v7  }
   0x8   :  { %p106_p3 = por %p105_p2, %p104_p1 }
   0xa   :  { %p107_p4 = pnand %p106_p3, %p100_p0 }
  0x1d   :  { %42 = vperm.xlu0 %89, %v14_v5  }
  0x82   :  { %v46_v19 = vpop.permute.xlu1 %45 }
  0x83   :  { %vm48_vm4 = vcmp.eq.s32.totalorder %v46_v19, %v40_v26 }
  0x86   :  { %v61_v20 = vpop.permute.xlu1 %60 }
  0x87   :  { %vm65_vm5 = vcmp.eq.s32.totalorder %v61_v20, 1 }
  0x90   :  { %v19_v9 = vpop.xlane.xlu0 %18 }
  0x91   :  { %v23_v10 = vsub.f32 %v12_v0, %v19_v9 }
  0x93   :  { %v25_v11 = vmul.f32 1.442695, %v23_v10 }
  0x94   :  { %v22_v12 = vpop.xlane.xlu0 %21 }
  0x95   :  { %91 = vpow2.f32 %v25_v11  ;;  %v24_v13 = vsub.f32 %v13_v1, %v22_v12 }
  0x97   :  { %v27_v14 = vmul.f32 1.442695, %v24_v13 }
  0x99   :  { %93 = vpow2.f32 %v27_v14 }
  0x9c   :  { %v43_v24 = vpop.permute.xlu0 %42 }
  0x9d   :  { %vm47_vm3 = vcmp.eq.s32.totalorder %v43_v24, %v40_v26 }
  0x9f   :  { %v92_v15 = vpop.eup %91 }
  0xa0   :  { %v29_v16 = vsel %vm16_vm0, %v92_v15, 0.0 }
  0xa1   :  { %30 = vadd.xlane.f32.xlu1 %v29_v16 }
  0xa3   :  { %v94_v17 = vpop.eup %93 }
  0xa4   :  { %v32_v18 = vsel %vm16_vm0, %v94_v17, 0.0 }
  0xa5   :  { %33 = vadd.xlane.f32.xlu1 %v32_v18 }
  0xb6   :  { %63 = vperm.xlu1 %90, %v58_v8  }
 0x12e   :  { %v31_v21 = vpop.xlane.xlu1 %30 }
 0x12f   :  { %95 = vrcp.f32 %v31_v21 }
 0x132   :  { %v34_v22 = vpop.xlane.xlu1 %33 }
 0x133   :  { %97 = vrcp.f32 %v34_v22 }
 0x136   :  { %v64_v33 = vpop.permute.xlu1 %63 }
 0x137   :  { %vm66_vm6 = vcmp.eq.s32.totalorder %v64_v33, 1 }
 0x139   :  { %v96_v25 = vpop.eup %95 }
 0x13a   :  { %v37_v27 = vmul.f32 %v96_v25, %v92_v15 }
 0x13c   :  { %v85_v28 = vadd.f32 -1.0, %v37_v27 }
 0x13d   :  { %v98_v29 = vpop.eup %97 }
 0x13e   :  { %v38_v30 = vmul.f32 %v98_v29, %v94_v17  ;;  %v51_v31 = vsel %vm47_vm3, %v85_v28, %v37_v27 }
 0x13f   :  { %v53_v34 = vmul.f32 %v51_v31, %v51_v31 }
 0x140   :  { %v86_v32 = vadd.f32 -1.0, %v38_v30 }
 0x141   :  { %v67_v38 = vsel %vm65_vm5, %v53_v34, 0.0 }
 0x142   :  { %v52_v35 = vsel %vm48_vm4, %v86_v32, %v38_v30 }
 0x143   :  { %v54_v36 = vmul.f32 %v52_v35, %v52_v35 }
 0x145   :  { %v68_v37 = vsel %vm66_vm6, %v54_v36, 0.0 }
 0x146   :  { %v69_v39 = vadd.f32 %v68_v37, %v67_v38 }
 0x148   :  { %70 = vst.msk [vmem:[#allocation2] sm:$0xff] %vm16_vm0, %v69_v39 }
 0x149   :  { %110 = shalt.err (!%p107_p4)
}
 0x14a   :  { %s111_s20 = scalar_lea.hbm %s171_s2, 128 }
 0x14b   :  { %p112_p5 = scmp.ne.s32.totalorder %s171_s2, %s111_s20  ;;  %p115_p6 = scmp.lt.u32.totalorder %s111_s20, %s171_s2 }
 0x14d   :  { %p117_p7 = pnand %p115_p6, %p112_p5 }
 0x14f   :  { %120 = shalt.err (!%p117_p7)
}
 0x150   :  { %80 = dma.vmem_to_hbm [thread:$0]  %s78_s1, 128, %s171_s2, [#allocation3]  }
 0x151   :  { %121 = dma.done.wait [#allocation3], 128  }
 0x152   :  { %122 = vsyncadd [#allocation3], 4294967168 }
 0x153   :  { %84 = vsyncpa [#allocation3], 1 }

</bundles_post_ra>
